<compile_context>
chip_gen: v7x
topology: tpu7x:2x2x1
jax: 0.10.0
libtpu: 0.0.40
codegen_flags: <defaults>
</compile_context>

<pallas_src>
import math
import functools

import jax
import jax.numpy as jnp
from jax.experimental import pallas as pl
from jax.experimental.pallas import tpu as pltpu


# --------------------------- in-kernel helpers ------------------------------

def _layer_norm(z, g, b, eps):
    mu = jnp.mean(z, axis=-1, keepdims=True)
    var = jnp.mean(jnp.square(z - mu), axis=-1, keepdims=True)
    return (z - mu) * jax.lax.rsqrt(var + eps) * g + b


def _mha_compute(q, k, v, mask_row, n_heads, attn_sink=None):
    # q: [Lq, D], k/v: [Lk, D], mask_row: [1, Lk] or [Lq, Lk] float 0/1.
    D = q.shape[-1]
    Dh = D // n_heads
    scale_inv = jnp.float32(1.0 / math.sqrt(Dh))
    ctx_parts = []
    for h in range(n_heads):                      # static unroll over heads
        sl = slice(h * Dh, (h + 1) * Dh)
        qh, kh, vh = q[:, sl], k[:, sl], v[:, sl]
        # scores: contract over Dh of both operands ('qd,kd->qk') without a transpose
        s = jax.lax.dot_general(qh, kh, (((1,), (1,)), ((), ())),
                                preferred_element_type=jnp.float32) * scale_inv
        s = jnp.where(mask_row > 0.5, s, jnp.float32(-1e10))   # masked_fill(mask==0,-1e10)
        s_max = jnp.max(s, axis=-1, keepdims=True)
        p = jnp.exp(s - s_max)
        p = p * pl.reciprocal(jnp.sum(p, axis=-1, keepdims=True), approx=True)
        if attn_sink is not None:
            attn_sink.append(p)
        ctx_parts.append(jnp.dot(p, vh, preferred_element_type=jnp.float32))
    return jnp.concatenate(ctx_parts, axis=-1)    # [Lq, D]


# ------------------------------ layer kernels -------------------------------

def _encoder_layer_kernel(x_ref, smask_ref,
                          wqkv_ref, bqkv_ref, wo_ref, bo_ref, ln1g_ref, ln1b_ref,
                          w1_ref, b1_ref, w2_ref, b2_ref, ln2g_ref, ln2b_ref,
                          o_ref, *, n_heads, eps):
    x = x_ref[0]                                  # [L, D]
    D = x.shape[-1]
    # fused QKV projection (one MXU pass)
    qkv = jnp.dot(x, wqkv_ref[...], preferred_element_type=jnp.float32) + bqkv_ref[...]
    q, k, v = qkv[:, :D], qkv[:, D:2 * D], qkv[:, 2 * D:]
    mrow = smask_ref[0]                           # [1, Ls]
    ctx = _mha_compute(q, k, v, mrow, n_heads)
    attn_out = jnp.dot(ctx, wo_ref[...], preferred_element_type=jnp.float32) + bo_ref[...]
    h1 = _layer_norm(x + attn_out, ln1g_ref[...], ln1b_ref[...], eps)
    # positionwise FFN
    ff = jnp.dot(h1, w1_ref[...], preferred_element_type=jnp.float32) + b1_ref[...]
    ff = jnp.maximum(ff, 0.0)
    ff = jnp.dot(ff, w2_ref[...], preferred_element_type=jnp.float32) + b2_ref[...]
    o_ref[0] = _layer_norm(h1 + ff, ln2g_ref[...], ln2b_ref[...], eps)


def _decoder_layer_kernel(x_ref, enc_ref, tmask_ref, smask_ref,
                          wqkv_s_ref, bqkv_s_ref, wo_s_ref, bo_s_ref, ln1g_ref, ln1b_ref,
                          wq_c_ref, bq_c_ref, wkv_c_ref, bkv_c_ref, wo_c_ref, bo_c_ref,
                          ln2g_ref, ln2b_ref,
                          w1_ref, b1_ref, w2_ref, b2_ref, ln3g_ref, ln3b_ref,
                          o_ref, *maybe_attn_ref, n_heads, eps):
    x = x_ref[0]                                  # [Lt, D]
    enc = enc_ref[0]                              # [Ls, D]
    D = x.shape[-1]

    # ---- masked self-attention ----
    qkv = jnp.dot(x, wqkv_s_ref[...], preferred_element_type=jnp.float32) + bqkv_s_ref[...]
    q, k, v = qkv[:, :D], qkv[:, D:2 * D], qkv[:, 2 * D:]
    tmask = tmask_ref[0]                          # [Lt, Lt]
    ctx = _mha_compute(q, k, v, tmask, n_heads)
    sa = jnp.dot(ctx, wo_s_ref[...], preferred_element_type=jnp.float32) + bo_s_ref[...]
    h1 = _layer_norm(x + sa, ln1g_ref[...], ln1b_ref[...], eps)

    # ---- cross attention (Q from decoder state, K/V from encoder output) ----
    qc = jnp.dot(h1, wq_c_ref[...], preferred_element_type=jnp.float32) + bq_c_ref[...]
    kvc = jnp.dot(enc, wkv_c_ref[...], preferred_element_type=jnp.float32) + bkv_c_ref[...]
    kc, vc = kvc[:, :D], kvc[:, D:]
    smask = smask_ref[0]                          # [1, Ls]
    attn_probs = [] if maybe_attn_ref else None
    ctx_c = _mha_compute(qc, kc, vc, smask, n_heads, attn_sink=attn_probs)
    ca = jnp.dot(ctx_c, wo_c_ref[...], preferred_element_type=jnp.float32) + bo_c_ref[...]
    h2 = _layer_norm(h1 + ca, ln2g_ref[...], ln2b_ref[...], eps)

    # ---- positionwise FFN ----
    ff = jnp.dot(h2, w1_ref[...], preferred_element_type=jnp.float32) + b1_ref[...]
    ff = jnp.maximum(ff, 0.0)
    ff = jnp.dot(ff, w2_ref[...], preferred_element_type=jnp.float32) + b2_ref[...]
    o_ref[0] = _layer_norm(h2 + ff, ln3g_ref[...], ln3b_ref[...], eps)

    if maybe_attn_ref:
        attn_ref = maybe_attn_ref[0]              # [1, H, Lt, Ls]
        for h in range(n_heads):
            attn_ref[0, h] = attn_probs[h]


def _linear_kernel(x_ref, w_ref, b_ref, o_ref):
    o_ref[...] = (jnp.dot(x_ref[...], w_ref[...],
                          preferred_element_type=jnp.float32) + b_ref[...])


# ------------------------------ kernel wrappers ------------------------------

def pallas_encoder_layer(x, smask, p, n_heads, eps=1e-5):
    B, L, D = x.shape
    P = p['w1'].shape[1]
    sa = p['self_attn']
    wqkv = jnp.concatenate([sa['wq'], sa['wk'], sa['wv']], axis=1)          # [D, 3D]
    bqkv = jnp.concatenate([sa['bq'], sa['bk'], sa['bv']]).reshape(1, 3 * D)

    full2 = lambda b: (0, 0)
    return pl.pallas_call(
        functools.partial(_encoder_layer_kernel, n_heads=n_heads, eps=eps),
        out_shape=jax.ShapeDtypeStruct((B, L, D), jnp.float32),
        grid=(B,),
        in_specs=[
            pl.BlockSpec((1, L, D), lambda b: (b, 0, 0)),    # x
            pl.BlockSpec((1, 1, L), lambda b: (b, 0, 0)),    # src mask [B,1,Ls]
            pl.BlockSpec((D, 3 * D), full2),                 # wqkv (resident)
            pl.BlockSpec((1, 3 * D), full2),                 # bqkv
            pl.BlockSpec((D, D), full2),                     # wo
            pl.BlockSpec((1, D), full2),                     # bo
            pl.BlockSpec((1, D), full2),                     # ln1 gamma
            pl.BlockSpec((1, D), full2),                     # ln1 beta
            pl.BlockSpec((D, P), full2),                     # w1
            pl.BlockSpec((1, P), full2),                     # b1
            pl.BlockSpec((P, D), full2),                     # w2
            pl.BlockSpec((1, D), full2),                     # b2
            pl.BlockSpec((1, D), full2),                     # ln2 gamma
            pl.BlockSpec((1, D), full2),                     # ln2 beta
        ],
        out_specs=pl.BlockSpec((1, L, D), lambda b: (b, 0, 0)),
        compiler_params=pltpu.CompilerParams(dimension_semantics=("parallel",)),
    )(x, smask, wqkv, bqkv,
      sa['wo'], sa['bo'].reshape(1, D),
      p['ln1_g'].reshape(1, D), p['ln1_b'].reshape(1, D),
      p['w1'], p['b1'].reshape(1, P), p['w2'], p['b2'].reshape(1, D),
      p['ln2_g'].reshape(1, D), p['ln2_b'].reshape(1, D))


def pallas_decoder_layer(x, enc_src, tmask, smask, p, n_heads, want_attn, eps=1e-5):
    B, Lt, D = x.shape
    Ls = enc_src.shape[1]
    P = p['w1'].shape[1]
    H = n_heads
    sa, ca = p['self_attn'], p['cross_attn']
    wqkv_s = jnp.concatenate([sa['wq'], sa['wk'], sa['wv']], axis=1)        # [D, 3D]
    bqkv_s = jnp.concatenate([sa['bq'], sa['bk'], sa['bv']]).reshape(1, 3 * D)
    wkv_c = jnp.concatenate([ca['wk'], ca['wv']], axis=1)                   # [D, 2D]
    bkv_c = jnp.concatenate([ca['bk'], ca['bv']]).reshape(1, 2 * D)

    full2 = lambda b: (0, 0)
    out_shapes = [jax.ShapeDtypeStruct((B, Lt, D), jnp.float32)]
    out_specs = [pl.BlockSpec((1, Lt, D), lambda b: (b, 0, 0))]
    if want_attn:
        out_shapes.append(jax.ShapeDtypeStruct((B, H, Lt, Ls), jnp.float32))
        out_specs.append(pl.BlockSpec((1, H, Lt, Ls), lambda b: (b, 0, 0, 0)))

    result = pl.pallas_call(
        functools.partial(_decoder_layer_kernel, n_heads=n_heads, eps=eps),
        out_shape=tuple(out_shapes),
        grid=(B,),
        in_specs=[
            pl.BlockSpec((1, Lt, D), lambda b: (b, 0, 0)),   # x
            pl.BlockSpec((1, Ls, D), lambda b: (b, 0, 0)),   # enc_src
            pl.BlockSpec((1, Lt, Lt), lambda b: (b, 0, 0)),  # tgt mask
            pl.BlockSpec((1, 1, Ls), lambda b: (b, 0, 0)),   # src mask
            pl.BlockSpec((D, 3 * D), full2),                 # self wqkv
            pl.BlockSpec((1, 3 * D), full2),                 # self bqkv
            pl.BlockSpec((D, D), full2),                     # self wo
            pl.BlockSpec((1, D), full2),                     # self bo
            pl.BlockSpec((1, D), full2),                     # ln1 gamma
            pl.BlockSpec((1, D), full2),                     # ln1 beta
            pl.BlockSpec((D, D), full2),                     # cross wq
            pl.BlockSpec((1, D), full2),                     # cross bq
            pl.BlockSpec((D, 2 * D), full2),                 # cross wkv
            pl.BlockSpec((1, 2 * D), full2),                 # cross bkv
            pl.BlockSpec((D, D), full2),                     # cross wo
            pl.BlockSpec((1, D), full2),                     # cross bo
            pl.BlockSpec((1, D), full2),                     # ln2 gamma
            pl.BlockSpec((1, D), full2),                     # ln2 beta
            pl.BlockSpec((D, P), full2),                     # w1
            pl.BlockSpec((1, P), full2),                     # b1
            pl.BlockSpec((P, D), full2),                     # w2
            pl.BlockSpec((1, D), full2),                     # b2
            pl.BlockSpec((1, D), full2),                     # ln3 gamma
            pl.BlockSpec((1, D), full2),                     # ln3 beta
        ],
        out_specs=tuple(out_specs),
        compiler_params=pltpu.CompilerParams(dimension_semantics=("parallel",)),
    )(x, enc_src, tmask, smask,
      wqkv_s, bqkv_s, sa['wo'], sa['bo'].reshape(1, D),
      p['ln1_g'].reshape(1, D), p['ln1_b'].reshape(1, D),
      ca['wq'], ca['bq'].reshape(1, D), wkv_c, bkv_c,
      ca['wo'], ca['bo'].reshape(1, D),
      p['ln2_g'].reshape(1, D), p['ln2_b'].reshape(1, D),
      p['w1'], p['b1'].reshape(1, P), p['w2'], p['b2'].reshape(1, D),
      p['ln3_g'].reshape(1, D), p['ln3_b'].reshape(1, D))

    if want_attn:
        return result[0], result[1]
    return result[0], None


def pallas_linear(x, w, b):
    # x: [M, K], w: [K, N], b: [N] -> [M, N]   (final vocab projection)
    M, K = x.shape
    N = w.shape[1]
    return pl.pallas_call(
        _linear_kernel,
        out_shape=jax.ShapeDtypeStruct((M, N), jnp.float32),
        grid=(1,),
        in_specs=[pl.BlockSpec((M, K), lambda i: (0, 0)),
                  pl.BlockSpec((K, N), lambda i: (0, 0)),
                  pl.BlockSpec((1, N), lambda i: (0, 0))],
        out_specs=pl.BlockSpec((M, N), lambda i: (0, 0)),
    )(x, w, b.reshape(1, N))


# ------------------------- model (glue around kernels) ---------------------

def make_src_mask(src, pad_idx):
    # (src != pad).unsqueeze(1).unsqueeze(2) carried compactly as [B, 1, Ls] float 0/1
    return (src != pad_idx).astype(jnp.float32)[:, None, :]


def make_tgt_mask(tgt, pad_idx):
    B, Lt = tgt.shape
    pad = (tgt != pad_idx)[:, None, :]                        # [B, 1, Lt]
    tril = jnp.tril(jnp.ones((Lt, Lt), dtype=bool))[None]     # [1, Lt, Lt]
    return jnp.logical_and(pad, tril).astype(jnp.float32)     # [B, Lt, Lt]


def encoder_forward(p, src, src_mask, n_heads):
    B, L = src.shape
    D = p['tok_emb'].shape[1]
    tok = jnp.take(p['tok_emb'], src, axis=0)                        # [B, L, D]
    pos = jnp.take(p['pos_emb'], jnp.arange(L), axis=0)[None, :, :]  # [1, L, D]
    x = tok * jnp.float32(math.sqrt(D)) + pos
    for lp in p['layers']:
        x = pallas_encoder_layer(x, src_mask, lp, n_heads)
    return x


def decoder_forward(p, tgt, enc_src, tgt_mask, src_mask, n_heads):
    B, L = tgt.shape
    D = p['tok_emb'].shape[1]
    tok = jnp.take(p['tok_emb'], tgt, axis=0)
    pos = jnp.take(p['pos_emb'], jnp.arange(L), axis=0)[None, :, :]
    x = tok * jnp.float32(math.sqrt(D)) + pos
    attention = None
    n_layers = len(p['layers'])
    for li, lp in enumerate(p['layers']):
        want_attn = (li == n_layers - 1)   # only last layer's attn probs are consumed
        x, attn = pallas_decoder_layer(x, enc_src, tgt_mask, src_mask, lp,
                                       n_heads, want_attn)
        if want_attn:
            attention = attn
    out = pallas_linear(x.reshape(B * L, D), p['fc_out_w'], p['fc_out_b'])
    return out.reshape(B, L, -1), attention


def nmt_forward(params, src, tgt, src_pad_idx, tgt_pad_idx, n_heads):
    src_mask = make_src_mask(src, src_pad_idx)          # [B,1,Ls]
    tgt_mask = make_tgt_mask(tgt, tgt_pad_idx)          # [B,Lt,Lt]
    enc_src = encoder_forward(params['encoder'], src, src_mask, n_heads)
    output, attention = decoder_forward(params['decoder'], tgt, enc_src,
                                        tgt_mask, src_mask, n_heads)
    return output, attention


# ------------------------- deterministic init ------------------------------

def _init_linear(key, fan_in, fan_out):
    kw, kb = jax.random.split(key)
    lim = 1.0 / math.sqrt(fan_in)
    w = jax.random.uniform(kw, (fan_in, fan_out), jnp.float32, -lim, lim)
    b = jax.random.uniform(kb, (fan_out,), jnp.float32, -lim, lim)
    return w, b


def _init_mha(key, hid_dim):
    ks = jax.random.split(key, 4)
    p = {}
    for name, k in zip(('q', 'k', 'v', 'o'), ks):
        w, b = _init_linear(k, hid_dim, hid_dim)
        p['w' + name], p['b' + name] = w, b
    return p


def _init_enc_layer(key, hid_dim, pf_dim):
    k1, k2, k3 = jax.random.split(key, 3)
    w1, b1 = _init_linear(k2, hid_dim, pf_dim)
    w2, b2 = _init_linear(k3, pf_dim, hid_dim)
    return dict(self_attn=_init_mha(k1, hid_dim),
                ln1_g=jnp.ones((hid_dim,), jnp.float32),
                ln1_b=jnp.zeros((hid_dim,), jnp.float32),
                ln2_g=jnp.ones((hid_dim,), jnp.float32),
                ln2_b=jnp.zeros((hid_dim,), jnp.float32),
                w1=w1, b1=b1, w2=w2, b2=b2)


def _init_dec_layer(key, hid_dim, pf_dim):
    k1, k2, k3, k4 = jax.random.split(key, 4)
    w1, b1 = _init_linear(k3, hid_dim, pf_dim)
    w2, b2 = _init_linear(k4, pf_dim, hid_dim)
    return dict(self_attn=_init_mha(k1, hid_dim),
                cross_attn=_init_mha(k2, hid_dim),
                ln1_g=jnp.ones((hid_dim,), jnp.float32),
                ln1_b=jnp.zeros((hid_dim,), jnp.float32),
                ln2_g=jnp.ones((hid_dim,), jnp.float32),
                ln2_b=jnp.zeros((hid_dim,), jnp.float32),
                ln3_g=jnp.ones((hid_dim,), jnp.float32),
                ln3_b=jnp.zeros((hid_dim,), jnp.float32),
                w1=w1, b1=b1, w2=w2, b2=b2)


def init_params(key, input_dim, output_dim, hid_dim, pf_dim, n_layers, max_len):
    ke, kd = jax.random.split(key)
    ke_t, ke_p, *ke_l = jax.random.split(ke, 2 + n_layers)
    kd_t, kd_p, kd_o, *kd_l = jax.random.split(kd, 3 + n_layers)
    enc = dict(
        tok_emb=0.02 * jax.random.normal(ke_t, (input_dim, hid_dim), jnp.float32),
        pos_emb=0.02 * jax.random.normal(ke_p, (max_len, hid_dim), jnp.float32),
        layers=[_init_enc_layer(k, hid_dim, pf_dim) for k in ke_l])
    fc_w, fc_b = _init_linear(kd_o, hid_dim, output_dim)
    dec = dict(
        tok_emb=0.02 * jax.random.normal(kd_t, (output_dim, hid_dim), jnp.float32),
        pos_emb=0.02 * jax.random.normal(kd_p, (max_len, hid_dim), jnp.float32),
        layers=[_init_dec_layer(k, hid_dim, pf_dim) for k in kd_l],
        fc_out_w=fc_w, fc_out_b=fc_b)
    return dict(encoder=enc, decoder=dec)


# --------------------------------- main -------------------------------------

if __name__ == "__main__":
    INPUT_DIM, OUTPUT_DIM = 20, 22          # src / tgt vocab sizes
    HID_DIM, N_HEADS, PF_DIM = 32, 4, 64
    N_LAYERS, MAX_LEN = 1, 16
    SRC_PAD_IDX, TGT_PAD_IDX = 0, 0
    B, SRC_LEN, TGT_LEN = 2, 8, 8

    root = jax.random.PRNGKey(0)
    kp, ks, kt = jax.random.split(root, 3)
    params = init_params(kp, INPUT_DIM, OUTPUT_DIM, HID_DIM, PF_DIM, N_LAYERS, MAX_LEN)

    src = jax.random.randint(ks, (B, SRC_LEN), 1, INPUT_DIM, dtype=jnp.int32)
    tgt = jax.random.randint(kt, (B, TGT_LEN), 1, OUTPUT_DIM, dtype=jnp.int32)
    # introduce some padding so the masks are non-trivial
    src = src.at[1, 6:].set(SRC_PAD_IDX)
    tgt = tgt.at[1, 5:].set(TGT_PAD_IDX)

    output, attention = nmt_forward(params, src, tgt, SRC_PAD_IDX, TGT_PAD_IDX, N_HEADS)
    output = jax.block_until_ready(output)
    attention = jax.block_until_ready(attention)

    assert output.shape == (B, TGT_LEN, OUTPUT_DIM)
    assert attention.shape == (B, N_HEADS, TGT_LEN, SRC_LEN)
    assert bool(jnp.all(jnp.isfinite(output)))
    assert bool(jnp.all(jnp.isfinite(attention)))
    print("KERNEL_OK")
</pallas_src>

<mosaic_0001>
module attributes {stable_mosaic.version = 11 : i64} {
  func.func @_encoder_layer_kernel(%arg0: i32, %arg1: memref<1x8x32xf32, #tpu.memory_space<vmem>>, %arg2: memref<1x1x8xf32, #tpu.memory_space<vmem>>, %arg3: memref<32x96xf32, #tpu.memory_space<vmem>>, %arg4: memref<1x96xf32, #tpu.memory_space<vmem>>, %arg5: memref<32x32xf32, #tpu.memory_space<vmem>>, %arg6: memref<1x32xf32, #tpu.memory_space<vmem>>, %arg7: memref<1x32xf32, #tpu.memory_space<vmem>>, %arg8: memref<1x32xf32, #tpu.memory_space<vmem>>, %arg9: memref<32x64xf32, #tpu.memory_space<vmem>>, %arg10: memref<1x64xf32, #tpu.memory_space<vmem>>, %arg11: memref<64x32xf32, #tpu.memory_space<vmem>>, %arg12: memref<1x32xf32, #tpu.memory_space<vmem>>, %arg13: memref<1x32xf32, #tpu.memory_space<vmem>>, %arg14: memref<1x32xf32, #tpu.memory_space<vmem>>, %arg15: memref<1x8x32xf32, #tpu.memory_space<vmem>>) attributes {dimension_semantics = [#tpu.dimension_semantics<parallel>], iteration_bounds = array<i64: 2>, scalar_prefetch = 0 : i64, scratch_operands = 0 : i64, tpu.core_type = #tpu.core_type<tc>, window_params = [{transform_indices = @transform_0, window_bounds = array<i64: 1, 8, 32>}, {transform_indices = @transform_1, window_bounds = array<i64: 1, 1, 8>}, {pipeline_mode = #tpu.pipeline_mode<synchronous>, transform_indices = @transform_2, window_bounds = array<i64: 32, 96>}, {pipeline_mode = #tpu.pipeline_mode<synchronous>, transform_indices = @transform_3, window_bounds = array<i64: 1, 96>}, {pipeline_mode = #tpu.pipeline_mode<synchronous>, transform_indices = @transform_4, window_bounds = array<i64: 32, 32>}, {pipeline_mode = #tpu.pipeline_mode<synchronous>, transform_indices = @transform_5, window_bounds = array<i64: 1, 32>}, {pipeline_mode = #tpu.pipeline_mode<synchronous>, transform_indices = @transform_6, window_bounds = array<i64: 1, 32>}, {pipeline_mode = #tpu.pipeline_mode<synchronous>, transform_indices = @transform_7, window_bounds = array<i64: 1, 32>}, {pipeline_mode = #tpu.pipeline_mode<synchronous>, transform_indices = @transform_8, window_bounds = array<i64: 32, 64>}, {pipeline_mode = #tpu.pipeline_mode<synchronous>, transform_indices = @transform_9, window_bounds = array<i64: 1, 64>}, {pipeline_mode = #tpu.pipeline_mode<synchronous>, transform_indices = @transform_10, window_bounds = array<i64: 64, 32>}, {pipeline_mode = #tpu.pipeline_mode<synchronous>, transform_indices = @transform_11, window_bounds = array<i64: 1, 32>}, {pipeline_mode = #tpu.pipeline_mode<synchronous>, transform_indices = @transform_12, window_bounds = array<i64: 1, 32>}, {pipeline_mode = #tpu.pipeline_mode<synchronous>, transform_indices = @transform_13, window_bounds = array<i64: 1, 32>}, {transform_indices = @transform_14, window_bounds = array<i64: 1, 8, 32>}]} {
    %c0 = arith.constant 0 : index
    %c0_0 = arith.constant 0 : index
    %c0_1 = arith.constant 0 : index
    %0 = vector.load %arg1[%c0, %c0_0, %c0_1] : memref<1x8x32xf32, #tpu.memory_space<vmem>>, vector<1x8x32xf32>
    %1 = vector.shape_cast %0 : vector<1x8x32xf32> to vector<8x32xf32>
    %c0_2 = arith.constant 0 : index
    %c0_3 = arith.constant 0 : index
    %2 = vector.load %arg3[%c0_2, %c0_3] : memref<32x96xf32, #tpu.memory_space<vmem>>, vector<32x96xf32>
    %cst = arith.constant dense<0.000000e+00> : vector<8x96xf32>
    %3 = tpu.matmul %1, %2, %cst {dimension_numbers = #tpu.dot_dimension_numbers<[1], [0], [0], [1], [0, 0, 1, 1], [], []>} : vector<8x32xf32>, vector<32x96xf32>, vector<8x96xf32> -> vector<8x96xf32>
    %c0_4 = arith.constant 0 : index
    %c0_5 = arith.constant 0 : index
    %4 = vector.load %arg4[%c0_4, %c0_5] : memref<1x96xf32, #tpu.memory_space<vmem>>, vector<1x96xf32>
    %5 = vector.broadcast %4 : vector<1x96xf32> to vector<8x96xf32>
    %6 = arith.addf %3, %5 : vector<8x96xf32>
    %7 = vector.extract_strided_slice %6 {offsets = [0, 0], sizes = [8, 32], strides = [1, 1]} : vector<8x96xf32> to vector<8x32xf32>
    %8 = vector.extract_strided_slice %6 {offsets = [0, 32], sizes = [8, 32], strides = [1, 1]} : vector<8x96xf32> to vector<8x32xf32>
    %9 = vector.extract_strided_slice %6 {offsets = [0, 64], sizes = [8, 32], strides = [1, 1]} : vector<8x96xf32> to vector<8x32xf32>
    %c0_6 = arith.constant 0 : index
    %c0_7 = arith.constant 0 : index
    %c0_8 = arith.constant 0 : index
    %10 = vector.load %arg2[%c0_6, %c0_7, %c0_8] : memref<1x1x8xf32, #tpu.memory_space<vmem>>, vector<1x1x8xf32>
    %11 = vector.shape_cast %10 : vector<1x1x8xf32> to vector<1x8xf32>
    %12 = vector.extract_strided_slice %7 {offsets = [0, 0], sizes = [8, 8], strides = [1, 1]} : vector<8x32xf32> to vector<8x8xf32>
    %13 = vector.extract_strided_slice %8 {offsets = [0, 0], sizes = [8, 8], strides = [1, 1]} : vector<8x32xf32> to vector<8x8xf32>
    %14 = vector.extract_strided_slice %9 {offsets = [0, 0], sizes = [8, 8], strides = [1, 1]} : vector<8x32xf32> to vector<8x8xf32>
    %cst_9 = arith.constant dense<0.000000e+00> : vector<8x8xf32>
    %15 = tpu.matmul %12, %13, %cst_9 {dimension_numbers = #tpu.dot_dimension_numbers<[1], [1], [0], [0], [0, 0, 1, 0], [], []>} : vector<8x8xf32>, vector<8x8xf32>, vector<8x8xf32> -> vector<8x8xf32>
    %cst_10 = arith.constant 0.353553385 : f32
    %16 = vector.broadcast %cst_10 : f32 to vector<8x8xf32>
    %17 = arith.mulf %15, %16 : vector<8x8xf32>
    %cst_11 = arith.constant 5.000000e-01 : f32
    %18 = vector.broadcast %cst_11 : f32 to vector<1x8xf32>
    %19 = arith.cmpf ogt, %11, %18 : vector<1x8xf32>
    %cst_12 = arith.constant -1.000000e+10 : f32
    %20 = vector.shape_cast %19 : vector<1x8xi1> to vector<1x8xi1>
    %21 = vector.broadcast %20 : vector<1x8xi1> to vector<8x8xi1>
    %22 = vector.broadcast %cst_12 : f32 to vector<8x8xf32>
    %23 = arith.select %21, %17, %22 : vector<8x8xi1>, vector<8x8xf32>
    %cst_13 = arith.constant dense<0xFF800000> : vector<8xf32>
    %24 = vector.multi_reduction <maximumf>, %23, %cst_13 [1] : vector<8x8xf32> to vector<8xf32>
    %25 = vector.shape_cast %24 : vector<8xf32> to vector<8x1xf32>
    %26 = vector.broadcast %25 : vector<8x1xf32> to vector<8x8xf32>
    %27 = arith.subf %23, %26 : vector<8x8xf32>
    %28 = math.exp %27 : vector<8x8xf32>
    %cst_14 = arith.constant dense<0.000000e+00> : vector<8xf32>
    %29 = vector.multi_reduction <add>, %28, %cst_14 [1] : vector<8x8xf32> to vector<8xf32>
    %30 = vector.shape_cast %29 : vector<8xf32> to vector<8x1xf32>
    %31 = tpu.reciprocal %30 {approx = true} : vector<8x1xf32> -> vector<8x1xf32>
    %32 = vector.broadcast %31 : vector<8x1xf32> to vector<8x8xf32>
    %33 = arith.mulf %28, %32 : vector<8x8xf32>
    %cst_15 = arith.constant dense<0.000000e+00> : vector<8x8xf32>
    %34 = tpu.matmul %33, %14, %cst_15 {dimension_numbers = #tpu.dot_dimension_numbers<[1], [0], [0], [1], [0, 0, 1, 1], [], []>} : vector<8x8xf32>, vector<8x8xf32>, vector<8x8xf32> -> vector<8x8xf32>
    %35 = vector.extract_strided_slice %7 {offsets = [0, 8], sizes = [8, 8], strides = [1, 1]} : vector<8x32xf32> to vector<8x8xf32>
    %36 = vector.extract_strided_slice %8 {offsets = [0, 8], sizes = [8, 8], strides = [1, 1]} : vector<8x32xf32> to vector<8x8xf32>
    %37 = vector.extract_strided_slice %9 {offsets = [0, 8], sizes = [8, 8], strides = [1, 1]} : vector<8x32xf32> to vector<8x8xf32>
    %cst_16 = arith.constant dense<0.000000e+00> : vector<8x8xf32>
    %38 = tpu.matmul %35, %36, %cst_16 {dimension_numbers = #tpu.dot_dimension_numbers<[1], [1], [0], [0], [0, 0, 1, 0], [], []>} : vector<8x8xf32>, vector<8x8xf32>, vector<8x8xf32> -> vector<8x8xf32>
    %cst_17 = arith.constant 0.353553385 : f32
    %39 = vector.broadcast %cst_17 : f32 to vector<8x8xf32>
    %40 = arith.mulf %38, %39 : vector<8x8xf32>
    %cst_18 = arith.constant 5.000000e-01 : f32
    %41 = vector.broadcast %cst_18 : f32 to vector<1x8xf32>
    %42 = arith.cmpf ogt, %11, %41 : vector<1x8xf32>
    %cst_19 = arith.constant -1.000000e+10 : f32
    %43 = vector.shape_cast %42 : vector<1x8xi1> to vector<1x8xi1>
    %44 = vector.broadcast %43 : vector<1x8xi1> to vector<8x8xi1>
    %45 = vector.broadcast %cst_19 : f32 to vector<8x8xf32>
    %46 = arith.select %44, %40, %45 : vector<8x8xi1>, vector<8x8xf32>
    %cst_20 = arith.constant dense<0xFF800000> : vector<8xf32>
    %47 = vector.multi_reduction <maximumf>, %46, %cst_20 [1] : vector<8x8xf32> to vector<8xf32>
    %48 = vector.shape_cast %47 : vector<8xf32> to vector<8x1xf32>
    %49 = vector.broadcast %48 : vector<8x1xf32> to vector<8x8xf32>
    %50 = arith.subf %46, %49 : vector<8x8xf32>
    %51 = math.exp %50 : vector<8x8xf32>
    %cst_21 = arith.constant dense<0.000000e+00> : vector<8xf32>
    %52 = vector.multi_reduction <add>, %51, %cst_21 [1] : vector<8x8xf32> to vector<8xf32>
    %53 = vector.shape_cast %52 : vector<8xf32> to vector<8x1xf32>
    %54 = tpu.reciprocal %53 {approx = true} : vector<8x1xf32> -> vector<8x1xf32>
    %55 = vector.broadcast %54 : vector<8x1xf32> to vector<8x8xf32>
    %56 = arith.mulf %51, %55 : vector<8x8xf32>
    %cst_22 = arith.constant dense<0.000000e+00> : vector<8x8xf32>
    %57 = tpu.matmul %56, %37, %cst_22 {dimension_numbers = #tpu.dot_dimension_numbers<[1], [0], [0], [1], [0, 0, 1, 1], [], []>} : vector<8x8xf32>, vector<8x8xf32>, vector<8x8xf32> -> vector<8x8xf32>
    %58 = vector.extract_strided_slice %7 {offsets = [0, 16], sizes = [8, 8], strides = [1, 1]} : vector<8x32xf32> to vector<8x8xf32>
    %59 = vector.extract_strided_slice %8 {offsets = [0, 16], sizes = [8, 8], strides = [1, 1]} : vector<8x32xf32> to vector<8x8xf32>
    %60 = vector.extract_strided_slice %9 {offsets = [0, 16], sizes = [8, 8], strides = [1, 1]} : vector<8x32xf32> to vector<8x8xf32>
    %cst_23 = arith.constant dense<0.000000e+00> : vector<8x8xf32>
    %61 = tpu.matmul %58, %59, %cst_23 {dimension_numbers = #tpu.dot_dimension_numbers<[1], [1], [0], [0], [0, 0, 1, 0], [], []>} : vector<8x8xf32>, vector<8x8xf32>, vector<8x8xf32> -> vector<8x8xf32>
    %cst_24 = arith.constant 0.353553385 : f32
    %62 = vector.broadcast %cst_24 : f32 to vector<8x8xf32>
    %63 = arith.mulf %61, %62 : vector<8x8xf32>
    %cst_25 = arith.constant 5.000000e-01 : f32
    %64 = vector.broadcast %cst_25 : f32 to vector<1x8xf32>
    %65 = arith.cmpf ogt, %11, %64 : vector<1x8xf32>
    %cst_26 = arith.constant -1.000000e+10 : f32
    %66 = vector.shape_cast %65 : vector<1x8xi1> to vector<1x8xi1>
    %67 = vector.broadcast %66 : vector<1x8xi1> to vector<8x8xi1>
    %68 = vector.broadcast %cst_26 : f32 to vector<8x8xf32>
    %69 = arith.select %67, %63, %68 : vector<8x8xi1>, vector<8x8xf32>
    %cst_27 = arith.constant dense<0xFF800000> : vector<8xf32>
    %70 = vector.multi_reduction <maximumf>, %69, %cst_27 [1] : vector<8x8xf32> to vector<8xf32>
    %71 = vector.shape_cast %70 : vector<8xf32> to vector<8x1xf32>
    %72 = vector.broadcast %71 : vector<8x1xf32> to vector<8x8xf32>
    %73 = arith.subf %69, %72 : vector<8x8xf32>
    %74 = math.exp %73 : vector<8x8xf32>
    %cst_28 = arith.constant dense<0.000000e+00> : vector<8xf32>
    %75 = vector.multi_reduction <add>, %74, %cst_28 [1] : vector<8x8xf32> to vector<8xf32>
    %76 = vector.shape_cast %75 : vector<8xf32> to vector<8x1xf32>
    %77 = tpu.reciprocal %76 {approx = true} : vector<8x1xf32> -> vector<8x1xf32>
    %78 = vector.broadcast %77 : vector<8x1xf32> to vector<8x8xf32>
    %79 = arith.mulf %74, %78 : vector<8x8xf32>
    %cst_29 = arith.constant dense<0.000000e+00> : vector<8x8xf32>
    %80 = tpu.matmul %79, %60, %cst_29 {dimension_numbers = #tpu.dot_dimension_numbers<[1], [0], [0], [1], [0, 0, 1, 1], [], []>} : vector<8x8xf32>, vector<8x8xf32>, vector<8x8xf32> -> vector<8x8xf32>
    %81 = vector.extract_strided_slice %7 {offsets = [0, 24], sizes = [8, 8], strides = [1, 1]} : vector<8x32xf32> to vector<8x8xf32>
    %82 = vector.extract_strided_slice %8 {offsets = [0, 24], sizes = [8, 8], strides = [1, 1]} : vector<8x32xf32> to vector<8x8xf32>
    %83 = vector.extract_strided_slice %9 {offsets = [0, 24], sizes = [8, 8], strides = [1, 1]} : vector<8x32xf32> to vector<8x8xf32>
    %cst_30 = arith.constant dense<0.000000e+00> : vector<8x8xf32>
    %84 = tpu.matmul %81, %82, %cst_30 {dimension_numbers = #tpu.dot_dimension_numbers<[1], [1], [0], [0], [0, 0, 1, 0], [], []>} : vector<8x8xf32>, vector<8x8xf32>, vector<8x8xf32> -> vector<8x8xf32>
    %cst_31 = arith.constant 0.353553385 : f32
    %85 = vector.broadcast %cst_31 : f32 to vector<8x8xf32>
    %86 = arith.mulf %84, %85 : vector<8x8xf32>
    %cst_32 = arith.constant 5.000000e-01 : f32
    %87 = vector.broadcast %cst_32 : f32 to vector<1x8xf32>
    %88 = arith.cmpf ogt, %11, %87 : vector<1x8xf32>
    %cst_33 = arith.constant -1.000000e+10 : f32
    %89 = vector.shape_cast %88 : vector<1x8xi1> to vector<1x8xi1>
    %90 = vector.broadcast %89 : vector<1x8xi1> to vector<8x8xi1>
    %91 = vector.broadcast %cst_33 : f32 to vector<8x8xf32>
    %92 = arith.select %90, %86, %91 : vector<8x8xi1>, vector<8x8xf32>
    %cst_34 = arith.constant dense<0xFF800000> : vector<8xf32>
    %93 = vector.multi_reduction <maximumf>, %92, %cst_34 [1] : vector<8x8xf32> to vector<8xf32>
    %94 = vector.shape_cast %93 : vector<8xf32> to vector<8x1xf32>
    %95 = vector.broadcast %94 : vector<8x1xf32> to vector<8x8xf32>
    %96 = arith.subf %92, %95 : vector<8x8xf32>
    %97 = math.exp %96 : vector<8x8xf32>
    %cst_35 = arith.constant dense<0.000000e+00> : vector<8xf32>
    %98 = vector.multi_reduction <add>, %97, %cst_35 [1] : vector<8x8xf32> to vector<8xf32>
    %99 = vector.shape_cast %98 : vector<8xf32> to vector<8x1xf32>
    %100 = tpu.reciprocal %99 {approx = true} : vector<8x1xf32> -> vector<8x1xf32>
    %101 = vector.broadcast %100 : vector<8x1xf32> to vector<8x8xf32>
    %102 = arith.mulf %97, %101 : vector<8x8xf32>
    %cst_36 = arith.constant dense<0.000000e+00> : vector<8x8xf32>
    %103 = tpu.matmul %102, %83, %cst_36 {dimension_numbers = #tpu.dot_dimension_numbers<[1], [0], [0], [1], [0, 0, 1, 1], [], []>} : vector<8x8xf32>, vector<8x8xf32>, vector<8x8xf32> -> vector<8x8xf32>
    %104 = tpu.concatenate %34, %57, %80, %103 in 1 : vector<8x8xf32>, vector<8x8xf32>, vector<8x8xf32>, vector<8x8xf32> -> vector<8x32xf32>
    %c0_37 = arith.constant 0 : index
    %c0_38 = arith.constant 0 : index
    %105 = vector.load %arg5[%c0_37, %c0_38] : memref<32x32xf32, #tpu.memory_space<vmem>>, vector<32x32xf32>
    %cst_39 = arith.constant dense<0.000000e+00> : vector<8x32xf32>
    %106 = tpu.matmul %104, %105, %cst_39 {dimension_numbers = #tpu.dot_dimension_numbers<[1], [0], [0], [1], [0, 0, 1, 1], [], []>} : vector<8x32xf32>, vector<32x32xf32>, vector<8x32xf32> -> vector<8x32xf32>
    %c0_40 = arith.constant 0 : index
    %c0_41 = arith.constant 0 : index
    %107 = vector.load %arg6[%c0_40, %c0_41] : memref<1x32xf32, #tpu.memory_space<vmem>>, vector<1x32xf32>
    %108 = vector.broadcast %107 : vector<1x32xf32> to vector<8x32xf32>
    %109 = arith.addf %106, %108 : vector<8x32xf32>
    %110 = arith.addf %1, %109 : vector<8x32xf32>
    %c0_42 = arith.constant 0 : index
    %c0_43 = arith.constant 0 : index
    %111 = vector.load %arg7[%c0_42, %c0_43] : memref<1x32xf32, #tpu.memory_space<vmem>>, vector<1x32xf32>
    %c0_44 = arith.constant 0 : index
    %c0_45 = arith.constant 0 : index
    %112 = vector.load %arg8[%c0_44, %c0_45] : memref<1x32xf32, #tpu.memory_space<vmem>>, vector<1x32xf32>
    %cst_46 = arith.constant dense<0.000000e+00> : vector<8xf32>
    %113 = vector.multi_reduction <add>, %110, %cst_46 [1] : vector<8x32xf32> to vector<8xf32>
    %114 = vector.shape_cast %113 : vector<8xf32> to vector<8x1xf32>
    %cst_47 = arith.constant 3.200000e+01 : f32
    %115 = vector.broadcast %cst_47 : f32 to vector<8x1xf32>
    %116 = arith.divf %114, %115 : vector<8x1xf32>
    %117 = vector.broadcast %116 : vector<8x1xf32> to vector<8x32xf32>
    %118 = arith.subf %110, %117 : vector<8x32xf32>
    %119 = arith.mulf %118, %118 : vector<8x32xf32>
    %cst_48 = arith.constant dense<0.000000e+00> : vector<8xf32>
    %120 = vector.multi_reduction <add>, %119, %cst_48 [1] : vector<8x32xf32> to vector<8xf32>
    %121 = vector.shape_cast %120 : vector<8xf32> to vector<8x1xf32>
    %cst_49 = arith.constant 3.200000e+01 : f32
    %122 = vector.broadcast %cst_49 : f32 to vector<8x1xf32>
    %123 = arith.divf %121, %122 : vector<8x1xf32>
    %124 = vector.broadcast %116 : vector<8x1xf32> to vector<8x32xf32>
    %125 = arith.subf %110, %124 : vector<8x32xf32>
    %cst_50 = arith.constant 9.99999974E-6 : f32
    %126 = vector.broadcast %cst_50 : f32 to vector<8x1xf32>
    %127 = arith.addf %123, %126 : vector<8x1xf32>
    %128 = math.rsqrt %127 : vector<8x1xf32>
    %129 = vector.broadcast %128 : vector<8x1xf32> to vector<8x32xf32>
    %130 = arith.mulf %125, %129 : vector<8x32xf32>
    %131 = vector.broadcast %111 : vector<1x32xf32> to vector<8x32xf32>
    %132 = arith.mulf %130, %131 : vector<8x32xf32>
    %133 = vector.broadcast %112 : vector<1x32xf32> to vector<8x32xf32>
    %134 = arith.addf %132, %133 : vector<8x32xf32>
    %c0_51 = arith.constant 0 : index
    %c0_52 = arith.constant 0 : index
    %135 = vector.load %arg9[%c0_51, %c0_52] : memref<32x64xf32, #tpu.memory_space<vmem>>, vector<32x64xf32>
    %cst_53 = arith.constant dense<0.000000e+00> : vector<8x64xf32>
    %136 = tpu.matmul %134, %135, %cst_53 {dimension_numbers = #tpu.dot_dimension_numbers<[1], [0], [0], [1], [0, 0, 1, 1], [], []>} : vector<8x32xf32>, vector<32x64xf32>, vector<8x64xf32> -> vector<8x64xf32>
    %c0_54 = arith.constant 0 : index
    %c0_55 = arith.constant 0 : index
    %137 = vector.load %arg10[%c0_54, %c0_55] : memref<1x64xf32, #tpu.memory_space<vmem>>, vector<1x64xf32>
    %138 = vector.broadcast %137 : vector<1x64xf32> to vector<8x64xf32>
    %139 = arith.addf %136, %138 : vector<8x64xf32>
    %cst_56 = arith.constant 0.000000e+00 : f32
    %140 = vector.broadcast %cst_56 : f32 to vector<8x64xf32>
    %141 = arith.maximumf %139, %140 : vector<8x64xf32>
    %c0_57 = arith.constant 0 : index
    %c0_58 = arith.constant 0 : index
    %142 = vector.load %arg11[%c0_57, %c0_58] : memref<64x32xf32, #tpu.memory_space<vmem>>, vector<64x32xf32>
    %cst_59 = arith.constant dense<0.000000e+00> : vector<8x32xf32>
    %143 = tpu.matmul %141, %142, %cst_59 {dimension_numbers = #tpu.dot_dimension_numbers<[1], [0], [0], [1], [0, 0, 1, 1], [], []>} : vector<8x64xf32>, vector<64x32xf32>, vector<8x32xf32> -> vector<8x32xf32>
    %c0_60 = arith.constant 0 : index
    %c0_61 = arith.constant 0 : index
    %144 = vector.load %arg12[%c0_60, %c0_61] : memref<1x32xf32, #tpu.memory_space<vmem>>, vector<1x32xf32>
    %145 = vector.broadcast %144 : vector<1x32xf32> to vector<8x32xf32>
    %146 = arith.addf %143, %145 : vector<8x32xf32>
    %147 = arith.addf %134, %146 : vector<8x32xf32>
    %c0_62 = arith.constant 0 : index
    %c0_63 = arith.constant 0 : index
    %148 = vector.load %arg13[%c0_62, %c0_63] : memref<1x32xf32, #tpu.memory_space<vmem>>, vector<1x32xf32>
    %c0_64 = arith.constant 0 : index
    %c0_65 = arith.constant 0 : index
    %149 = vector.load %arg14[%c0_64, %c0_65] : memref<1x32xf32, #tpu.memory_space<vmem>>, vector<1x32xf32>
    %cst_66 = arith.constant dense<0.000000e+00> : vector<8xf32>
    %150 = vector.multi_reduction <add>, %147, %cst_66 [1] : vector<8x32xf32> to vector<8xf32>
    %151 = vector.shape_cast %150 : vector<8xf32> to vector<8x1xf32>
    %cst_67 = arith.constant 3.200000e+01 : f32
    %152 = vector.broadcast %cst_67 : f32 to vector<8x1xf32>
    %153 = arith.divf %151, %152 : vector<8x1xf32>
    %154 = vector.broadcast %153 : vector<8x1xf32> to vector<8x32xf32>
    %155 = arith.subf %147, %154 : vector<8x32xf32>
    %156 = arith.mulf %155, %155 : vector<8x32xf32>
    %cst_68 = arith.constant dense<0.000000e+00> : vector<8xf32>
    %157 = vector.multi_reduction <add>, %156, %cst_68 [1] : vector<8x32xf32> to vector<8xf32>
    %158 = vector.shape_cast %157 : vector<8xf32> to vector<8x1xf32>
    %cst_69 = arith.constant 3.200000e+01 : f32
    %159 = vector.broadcast %cst_69 : f32 to vector<8x1xf32>
    %160 = arith.divf %158, %159 : vector<8x1xf32>
    %161 = vector.broadcast %153 : vector<8x1xf32> to vector<8x32xf32>
    %162 = arith.subf %147, %161 : vector<8x32xf32>
    %cst_70 = arith.constant 9.99999974E-6 : f32
    %163 = vector.broadcast %cst_70 : f32 to vector<8x1xf32>
    %164 = arith.addf %160, %163 : vector<8x1xf32>
    %165 = math.rsqrt %164 : vector<8x1xf32>
    %166 = vector.broadcast %165 : vector<8x1xf32> to vector<8x32xf32>
    %167 = arith.mulf %162, %166 : vector<8x32xf32>
    %168 = vector.broadcast %148 : vector<1x32xf32> to vector<8x32xf32>
    %169 = arith.mulf %167, %168 : vector<8x32xf32>
    %170 = vector.broadcast %149 : vector<1x32xf32> to vector<8x32xf32>
    %171 = arith.addf %169, %170 : vector<8x32xf32>
    %c0_71 = arith.constant 0 : index
    %c0_72 = arith.constant 0 : index
    %c0_73 = arith.constant 0 : index
    %172 = vector.load %arg15[%c0_71, %c0_72, %c0_73] : memref<1x8x32xf32, #tpu.memory_space<vmem>>, vector<1x8x32xf32>
    %173 = vector.shape_cast %172 : vector<1x8x32xf32> to vector<8x32xf32>
    %174 = vector.shape_cast %171 : vector<8x32xf32> to vector<1x8x32xf32>
    tpu.vector_store %arg15[%c0_71, %c0_72, %c0_73], %174 {strides = array<i32>} : memref<1x8x32xf32, #tpu.memory_space<vmem>>, vector<1x8x32xf32>,
    return
  }
  func.func @transform_0(%arg0: i32) -> (i32, i32, i32) {
    %c0_i32 = arith.constant 0 : i32
    %c0_i32_0 = arith.constant 0 : i32
    %c0_i32_1 = arith.constant 0 : i32
    return %arg0, %c0_i32, %c0_i32_0 : i32, i32, i32
  }
  func.func @transform_1(%arg0: i32) -> (i32, i32, i32) {
    %c0_i32 = arith.constant 0 : i32
    %c0_i32_0 = arith.constant 0 : i32
    %c0_i32_1 = arith.constant 0 : i32
    return %arg0, %c0_i32, %c0_i32_0 : i32, i32, i32
  }
  func.func @transform_2(%arg0: i32) -> (i32, i32) {
    %c0_i32 = arith.constant 0 : i32
    %c0_i32_0 = arith.constant 0 : i32
    %c0_i32_1 = arith.constant 0 : i32
    return %c0_i32, %c0_i32_0 : i32, i32
  }
  func.func @transform_3(%arg0: i32) -> (i32, i32) {
    %c0_i32 = arith.constant 0 : i32
    %c0_i32_0 = arith.constant 0 : i32
    %c0_i32_1 = arith.constant 0 : i32
    return %c0_i32, %c0_i32_0 : i32, i32
  }
  func.func @transform_4(%arg0: i32) -> (i32, i32) {
    %c0_i32 = arith.constant 0 : i32
    %c0_i32_0 = arith.constant 0 : i32
    %c0_i32_1 = arith.constant 0 : i32
    return %c0_i32, %c0_i32_0 : i32, i32
  }
  func.func @transform_5(%arg0: i32) -> (i32, i32) {
    %c0_i32 = arith.constant 0 : i32
    %c0_i32_0 = arith.constant 0 : i32
    %c0_i32_1 = arith.constant 0 : i32
    return %c0_i32, %c0_i32_0 : i32, i32
  }
  func.func @transform_6(%arg0: i32) -> (i32, i32) {
    %c0_i32 = arith.constant 0 : i32
    %c0_i32_0 = arith.constant 0 : i32
    %c0_i32_1 = arith.constant 0 : i32
    return %c0_i32, %c0_i32_0 : i32, i32
  }
  func.func @transform_7(%arg0: i32) -> (i32, i32) {
    %c0_i32 = arith.constant 0 : i32
    %c0_i32_0 = arith.constant 0 : i32
    %c0_i32_1 = arith.constant 0 : i32
    return %c0_i32, %c0_i32_0 : i32, i32
  }
  func.func @transform_8(%arg0: i32) -> (i32, i32) {
    %c0_i32 = arith.constant 0 : i32
    %c0_i32_0 = arith.constant 0 : i32
    %c0_i32_1 = arith.constant 0 : i32
    return %c0_i32, %c0_i32_0 : i32, i32
  }
  func.func @transform_9(%arg0: i32) -> (i32, i32) {
    %c0_i32 = arith.constant 0 : i32
    %c0_i32_0 = arith.constant 0 : i32
    %c0_i32_1 = arith.constant 0 : i32
    return %c0_i32, %c0_i32_0 : i32, i32
  }
  func.func @transform_10(%arg0: i32) -> (i32, i32) {
    %c0_i32 = arith.constant 0 : i32
    %c0_i32_0 = arith.constant 0 : i32
    %c0_i32_1 = arith.constant 0 : i32
    return %c0_i32, %c0_i32_0 : i32, i32
  }
  func.func @transform_11(%arg0: i32) -> (i32, i32) {
    %c0_i32 = arith.constant 0 : i32
    %c0_i32_0 = arith.constant 0 : i32
    %c0_i32_1 = arith.constant 0 : i32
    return %c0_i32, %c0_i32_0 : i32, i32
  }
  func.func @transform_12(%arg0: i32) -> (i32, i32) {
    %c0_i32 = arith.constant 0 : i32
    %c0_i32_0 = arith.constant 0 : i32
    %c0_i32_1 = arith.constant 0 : i32
    return %c0_i32, %c0_i32_0 : i32, i32
  }
  func.func @transform_13(%arg0: i32) -> (i32, i32) {
    %c0_i32 = arith.constant 0 : i32
    %c0_i32_0 = arith.constant 0 : i32
    %c0_i32_1 = arith.constant 0 : i32
    return %c0_i32, %c0_i32_0 : i32, i32
  }
  func.func @transform_14(%arg0: i32) -> (i32, i32, i32) {
    %c0_i32 = arith.constant 0 : i32
    %c0_i32_0 = arith.constant 0 : i32
    %c0_i32_1 = arith.constant 0 : i32
    return %arg0, %c0_i32, %c0_i32_0 : i32, i32, i32
  }
}

</mosaic_0001>

<bundles_post_ra>
// kernel: tpu_custom_call.1
= control target key start
LH: loop header
LB: loop body
LE: loop exit
PB: predicated region body
PF: predicated region fallthrough
CT: control target
= control target key end

     0   :  { %s2701_s0 = inlined_call_operand.hbm [shape: f32[2,8,32], index: 0, kind: input, shape index: {}]   ;;  %s2702_s1 = inlined_call_operand.vmem [shape: f32[2,1,8], index: 1, kind: input, shape index: {}]   ;;  %s2703_s2 = inlined_call_operand.vmem [shape: f32[32,96], index: 2, kind: input, shape index: {}]   ;;  %s2704_s3 = inlined_call_operand.vmem [shape: f32[1,96], index: 3, kind: input, shape index: {}]   ;;  %s2705_s4 = inlined_call_operand.vmem [shape: f32[32,32], index: 4, kind: input, shape index: {}]   ;;  %s2706_s5 = inlined_call_operand.vmem [shape: f32[1,32], index: 5, kind: input, shape index: {}]   ;;  %s2707_s6 = inlined_call_operand.vmem [shape: f32[1,32], index: 6, kind: input, shape index: {}]   ;;  %s2708_s7 = inlined_call_operand.hbm [shape: f32[1,32], index: 7, kind: input, shape index: {}]   ;;  %s2709_s8 = inlined_call_operand.vmem [shape: f32[32,64], index: 8, kind: input, shape index: {}]   ;;  %s2710_s9 = inlined_call_operand.hbm [shape: f32[1,64], index: 9, kind: input, shape index: {}]   ;;  %s2711_s10 = inlined_call_operand.vmem [shape: f32[64,32], index: 10, kind: input, shape index: {}]   ;;  %s2712_s11 = inlined_call_operand.vmem [shape: f32[1,32], index: 11, kind: input, shape index: {}]   ;;  %s2713_s12 = inlined_call_operand.vmem [shape: f32[1,32], index: 12, kind: input, shape index: {}]   ;;  %s2714_s13 = inlined_call_operand.vmem [shape: f32[1,32], index: 13, kind: input, shape index: {}]   ;;  %s2715_s14 = inlined_call_operand.hbm [shape: f32[2,8,32], index: 14, kind: output, shape index: {}]  }
   0x1   :  { %2722 = sst [smem:[#allocation14_spill]] %s2701_s0 }
   0x2   :  { %2723 = sst [smem:[#allocation15_spill]] %s2702_s1 }
   0x3   :  { %2724 = sst [smem:[#allocation16_spill]] %s2708_s7 }
   0x4   :  { %2725 = sst [smem:[#allocation17_spill]] %s2713_s12 }
   0x5   :  { %2726 = sst [smem:[#allocation18_spill]] %s2714_s13 }
   0x6   :  { %2727 = sst [smem:[#allocation19_spill]] %s2715_s14 }
   0x7   :  { %19 = vsyncpa [#allocation3], 0 }
   0x8   :  { %21 = vsyncpa [#allocation3 + $0x1], 0 }
   0x9   :  { %22 = vsyncpa [#allocation6], 0 }
   0xa   :  { %23 = vsyncpa [#allocation4], 0 }
   0xb   :  { %25 = vsyncpa [#allocation4 + $0x1], 0  ;;  %s2295_s29 = smov 0   ;;  %s2297_s30 = smov 0  }
   0xc   :  { %s2299_s15 = smov 0   ;;  %s2301_s16 = smov 0  }
   0xd LB: > { %2728 = sst [smem:[#allocation12_spill]] %s2184_s29  ;;  %s2316_s17 = sadd.s32 4294967295, %s2196_s16   ;;  %s2196_s16 = sphi %s2301_s16, %s2755_s16   ;;  %s2192_s15 = sphi %s2299_s15, %s2754_s15   ;;  %s2188_s30 = sphi %s2297_s30, %s2753_s30   ;;  %s2184_s29 = sphi %s2295_s29, %s2752_s29  }
   0xe   : > { %s1733_s18 = sadd.s32 4294967294, %s2196_s16   ;;  %p51_p0 = scmp.ne.s32.totalorder %s2188_s30, %s2184_s29 }
   0xf   : > { %p2719_p1 = scmp.eq.s32.totalorder %s2316_s17, 0  ;;  %p359_p3 = scmp.eq.s32.totalorder %s1733_s18, 1 }
  0x10   : > { %p1734_p5 = scmp.ge.s32.totalorder %s2196_s16, 1  ;;  %p366_p7 = scmp.lt.s32.totalorder %s2196_s16, 3 }
  0x11   : > { %p2325_p4 = por %p2719_p1, %p51_p0  ;;  %p2330_p6 = por %p359_p3, %p51_p0 }
  0x12   : > { %p2335_p8 = pnand %p1734_p5, %p366_p7  ;;  %s2198_s22 = smov [#allocation5]  }
  0x13   : > { %s2729_s19 = scalar_select %p2325_p4, 1, 0 }
  0x14   : > { %s2730_s20 = scalar_select %p2330_p6, 1, 0 }
  0x15   : > { %s2732_s21 = scalar_select %p2335_p8, 1, 0 }
  0x16   : > { %2731 = sst [smem:[#allocation13_spill]] %s2730_s20  ;;  %s394_s23 = sshll.u32 %s2198_s22, 4  ;;  %s395_s23 = int_to_ptr.vmem [resolvable:$true] %s394_s23 }
  0x17   : > { %p1947_p10 = pneg %p2335_p8  ;;  %s2199_s24 = smov [#allocation7]  }
  0x18   : > { %s408_s25 = sshll.u32 %s2199_s24, 4  ;;  %s2351_s27 = sadd.s32 1, %s2196_s16   ;;  %s2348_s25 = int_to_ptr.vmem [resolvable:$true] %s408_s25 }
  0x19   : > { %p2344_p11 = pnand %p1947_p10, %p2719_p1  ;;  %s2734_s7 = sld [smem:[#allocation16_spill]] }
  0x1b   : > { %p2042_p13 = pneg %p2344_p11 }
  0x1f   : > { %s2040_s20 = scalar_lea.hbm %s2734_s7, 16 }
  0x20   : > { %p2041_p12 = scmp.ne.s32.totalorder %s2734_s7, %s2040_s20  ;;  %p2047_p5 = scmp.lt.u32.totalorder %s2040_s20, %s2734_s7 }
  0x22   : > { %p2043_p0 = pnand %p2042_p13, %p2041_p12 }
  0x24   : > { %p2044_p3 = pneg %p2043_p0 }
  0x26   : > { %p2049_p7 = pnand %p2047_p5, %p2044_p3 }
  0x28   : > { %2052 = shalt.err (!%p2049_p7)
}
  0x29   : > { %s2053_s28 = scalar_lea.vmem %s395_s23, 16  ;;  %s2060_s14 = scalar_lea.vmem %s395_s23, 32 }
  0x2a   : > { %p2054_p10 = scmp.ne.s32.totalorder %s395_s23, %s2053_s28  ;;  %p2061_p2 = scmp.lt.s32.totalorder %s395_s23, %s395_s23 }
  0x2b   : > { %p2062_p6 = scmp.lt.s32.totalorder %s2060_s14, %s2053_s28 }
  0x2c   : > { %p2056_p9 = pnand %p2054_p10, %p2042_p13 }
  0x2d   : > { %p2063_p4 = por %p2062_p6, %p2061_p2 }
  0x2e   : > { %p2057_p1 = pneg %p2056_p9 }
  0x30   : > { %p2064_p8 = pnand %p2063_p4, %p2057_p1 }
  0x32   : > { %2067 = shalt.err (!%p2064_p8)
}
  0x33   : > { %1950 = dma.hbm_to_vmem [thread:$0]  (!%p2344_p11), %s2734_s7, 16, %s395_s23, [#allocation6]  }
  0x34   : > { %s2068_s22 = scalar_lea.hbm %s2710_s9, 16 }
  0x35   : > { %p2069_p9 = scmp.ne.s32.totalorder %s2710_s9, %s2068_s22  ;;  %p2075_p4 = scmp.lt.u32.totalorder %s2068_s22, %s2710_s9 }
  0x37   : > { %p2071_p2 = pnand %p2069_p9, %p2042_p13 }
  0x39   : > { %p2072_p1 = pneg %p2071_p2 }
  0x3b   : > { %p2077_p6 = pnand %p2075_p4, %p2072_p1 }
  0x3d   : > { %2080 = shalt.err (!%p2077_p6)
}
  0x3e   : > { %s2081_s23 = scalar_lea.vmem %s2348_s25, 16  ;;  %s2088_s12 = scalar_lea.vmem %s2348_s25, 32 }
  0x3f   : > { %p2082_p8 = scmp.ne.s32.totalorder %s2348_s25, %s2081_s23  ;;  %p2089_p3 = scmp.lt.s32.totalorder %s2348_s25, %s2348_s25 }
  0x40   : > { %p2090_p5 = scmp.lt.s32.totalorder %s2088_s12, %s2081_s23 }
  0x41   : > { %p2084_p12 = pnand %p2082_p8, %p2042_p13 }
  0x42   : > { %p2091_p7 = por %p2090_p5, %p2089_p3 }
  0x43   : > { %p2085_p0 = pneg %p2084_p12 }
  0x45   : > { %p2092_p10 = pnand %p2091_p7, %p2085_p0 }
  0x47   : > { %2095 = shalt.err (!%p2092_p10)
}
  0x48   : > { %1953 = dma.hbm_to_vmem [thread:$0]  (!%p2344_p11), %s2710_s9, 16, %s2348_s25, [#allocation6]  }
  0x49   : > { %s2735_s20 = ssub.s32 %s2196_s16, %s2351_s27  ;;  %s38_s18 = sadd.s32 1, %s2192_s15 }
  0x4a   : > { %p36_p13 = scmp.eq.s32.totalorder %s2735_s20, 0  ;;  %p45_p9 = scmp.ne.s32.totalorder %s2192_s15, %s2188_s30 }
  0x4b   : > { %p46_p2 = scmp.eq.s32.totalorder %s2196_s16, 0  ;;  %p2736_p4 = scmp.eq.s32.totalorder %s2316_s17, 1 }
  0x4c   : > { %s2411_s26 = scalar_select %p36_p13, %s2192_s15, %s38_s18  }
  0x4d   : > { %p47_p1 = por %p46_p2, %p45_p9  ;;  %p2415_p6 = por %p2736_p4, %p45_p9 }
  0x4e   : > { %p1964_p8 = scmp.lt.s32.totalorder %s2196_s16, 2  ;;  %s431_s24 = sand.u32 1, %s2192_s15  }
  0x4f   : > { %s1738_s28 = sshll.u32 %s431_s24, 3  ;;  %s1739_s14 = sshll.u32 %s2196_s16, 7 }
  0x50   : > { %s2738_s0 = sld [smem:[#allocation14_spill]]  ;;  %s435_s29 = scalar_lea.vmem [#allocation2], %s1738_s28 }
  0x51   : > { %s442_s13 = sshll.u32 %s435_s29, 4  ;;  %p2429_p11 = pnand %p1964_p8, %p47_p1  ;;  %s2427_s13 = int_to_ptr.vmem [resolvable:$true] %s442_s13 }
  0x52   : > { %s432_s18 = scalar_lea.sflag [#allocation3], %s431_s24 }
  0x53   : > { %p2098_p0 = pneg %p2429_p11 }
  0x56   : > { %s2425_s25 = scalar_lea.hbm %s2738_s0, %s1739_s14  ;;  %s2101_s23 = scalar_lea.hbm %s2738_s0, 256 }
  0x57   : > { %s2096_s7 = scalar_lea.hbm %s2425_s25, 128  ;;  %p2102_p7 = scmp.lt.u32.totalorder %s2425_s25, %s2738_s0 }
  0x58   : > { %p2097_p12 = scmp.ne.s32.totalorder %s2425_s25, %s2096_s7  ;;  %p2103_p10 = scmp.lt.u32.totalorder %s2101_s23, %s2096_s7 }
  0x59   : > { %p2105_p9 = scmp.lt.u32.totalorder %s2096_s7, %s2425_s25 }
  0x5a   : > { %p2099_p3 = pnand %p2098_p0, %p2097_p12  ;;  %p2104_p13 = por %p2103_p10, %p2102_p7 }
  0x5c   : > { %p2100_p5 = pneg %p2099_p3  ;;  %p2106_p2 = por %p2105_p9, %p2104_p13 }
  0x5e   : > { %p2107_p1 = pnand %p2106_p2, %p2100_p5 }
  0x60   : > { %2110 = shalt.err (!%p2107_p1)
}
  0x61   : > { %s2111_s24 = scalar_lea.vmem %s2427_s13, 128  ;;  %s2200_s14 = smov [#allocation2]  }
  0x62   : > { %p2112_p4 = scmp.ne.s32.totalorder %s2427_s13, %s2111_s24  ;;  %s2116_s28 = sshll.u32 %s2200_s14, 4  ;;  %s2117_s28 = int_to_ptr.vmem [resolvable:$false] %s2116_s28 }
  0x63   : > { %s2118_s12 = scalar_lea.vmem %s2117_s28, 256  ;;  %p2119_p3 = scmp.lt.s32.totalorder %s2427_s13, %s2117_s28 }
  0x64   : > { %p2114_p8 = pnand %p2112_p4, %p2098_p0  ;;  %p2120_p7 = scmp.lt.s32.totalorder %s2118_s12, %s2111_s24 }
  0x66   : > { %p2115_p12 = pneg %p2114_p8  ;;  %p2121_p10 = por %p2120_p7, %p2119_p3 }
  0x68   : > { %p2122_p13 = pnand %p2121_p10, %p2115_p12 }
  0x6a   : > { %2125 = shalt.err (!%p2122_p13)
}
  0x6b   : > { %1957 = dma.hbm_to_vmem [thread:$0]  (!%p2429_p11), %s2425_s25, 128, %s2427_s13, %s432_s18  }
  0x6c   : > { %p2740_p5 = scmp.ne.s32.totalorder %s2732_s21, 0 }
  0x6d   : > { %s2461_s7 = sand.u32 (!%p2740_p5), 1, %s2188_s30   ;;  %p2741_p0 = scmp.ne.s32.totalorder (!%p2740_p5), %s2729_s19, 0 }
  0x6e   : > { %457 = sbr.rel (%p2740_p5) target bundleno = 2665 (0xa69), region = 76  ;;  %s1741_s23 = sshll.u32 (!%p2740_p5), %s2461_s7, 3 }
  0x6f   : > { %s460_s29 = scalar_lea.sflag (!%p2740_p5), [#allocation3], %s2461_s7  ;;  %s463_s24 = scalar_lea.vmem (!%p2740_p5), [#allocation2], %s1741_s23 }
  0x75   : > { %2171 = dma.done.wait (%p2741_p0), %s460_s29, 128  }
  0x76   : > { %2173 = vsyncadd (%p2741_p0), %s460_s29, 4294967168  ;;  %p2742_p11 = scmp.eq.s32.totalorder %s2316_s17, 0 }
  0x78   : > { %2175 = dma.done.wait (%p2742_p11), [#allocation6], 32   ;;  %p2743_p9 = pmov %p2742_p11 }
  0x79   : > { %v2201_v0 = vmov 0.0|0.0   ;;  %vm2202_vm0 = vmmov 0   ;;  %v2203_v1 = vmov 0.0   ;;  %v523_v2 = vld [vmem:[%s2703_s2] sm:$0xff]  ;;  %v524_v3 = vld [vmem:[%s2703_s2 + $0x8] sm:$0xff]  ;;  %v525_v4 = vld [vmem:[%s2703_s2 + $0x10] sm:$0xff]  ;;  %v690_v20 = vlaneseq }
  0x7a   : > { %2177 = vsyncadd (%p2743_p9), [#allocation6], 4294967264  ;;  %1905 = vmatprep.subr.bf16.mxu1 %v2201_v0  ;;  %1821 = vmatprep.mubr.msk.f32.mxu1 %vm2202_vm0, %v2203_v1  ;;  %v1906_v5 = vpack.c.bf16 %v524_v3, %v523_v2  ;;  %v526_v6 = vld [vmem:[%s2703_s2 + $0x18] sm:$0xff]  ;;  %v2494_v8 = vld [vmem:[%s463_s24] sm:$0xff]  ;;  %vm534_vm1 = vcmask 261120   ;;  %s2204_s19 = smov 120  }
  0x7b   : > { %1834 = vmatprep.subr.mxu0 %v2203_v1  ;;  %1836 = vmatprep.mubr.msk.f32.mxu0 %vm2202_vm0, %v2203_v1  ;;  %v1909_v7 = vpack.c.bf16 %v526_v6, %v525_v4  ;;  %v1745_v9 = vld [vmem:[%s2704_s3] ss:$0 sm:$0xff]  ;;  %s2205_s24 = smov 96   ;;  %s2206_s21 = smov 80   ;;  %vm612_vm2 = vcmask 64512   ;;  %v691_v22 = vshrl.u32 %v690_v20, 7 }
  0x7c   : > { %1907 = vmatpush3.bf16.msra.mxu1 %v1906_v5  ;;  %s2207_s25 = smov 88   ;;  %s2208_s13 = smov 72   ;;  %v2211_v24 = vmov 0   ;;  %vm1297_vm5 = vcmask 130048   ;;  %vm1299_vm6 = vcmask 195584   ;;  %vm1516_vm7 = vcmask 523264  }
  0x7d   : > { %1908 = vmatprep.subr.bf16.mxu1 %v2201_v0  ;;  %s2209_s20 = smov 112   ;;  %s2210_s18 = smov 104   ;;  %v692_v23 = vsub.s32 0, %v691_v22  ;;  %v1301_v22 = vld [vmem:[%s2705_s4] sm:$0xff] }
  0x7e   : > { %p519_p2 = scmp.lt.s32.totalorder %s2316_s17, 1  ;;  %s2744_s1 = sld [smem:[#allocation15_spill]] }
  0x7f   : > { %s2216_s28 = smov 8   ;;  %s2747_s0 = sld [smem:[#allocation19_spill]] }
  0x80   : > { %1910 = vmatpush3.bf16.msra.mxu1 %v1909_v7  ;;  %s520_s14 = scalar_select %p519_p2, %s2316_s17, 1 }
  0x81   : > { %1824 = vmatprep.subr.mxu1 %v2203_v1 }
  0x83   : > { %1822 = vmatmul.mubr.msk.f32.vlgmr.msra.gmra.mrb[0].mxu1 %vm534_vm1, %v2494_v8 }
  0x84   : > { %1826 = vmatprep.mubr.msk.f32.mxu1 %vm2202_vm0, %v2203_v1  ;;  %s521_s29 = scalar_lea.vmem %s2744_s1, %s520_s14  ;;  %s1770_s14 = sshll.u32 %s2316_s17, 7 }
  0x85   : > { %v608_v21 = vld [vmem:[%s521_s29] sm:$0x1]  ;;  %s2656_s1 = scalar_lea.hbm %s2747_s0, %s1770_s14  ;;  %s2219_s17 = smov [#allocation8]  }
  0x86   : > { %vm688_vm3 = vcmp.gt.f32.partialorder %v608_v21, 0.5 }
  0x87   : > { %v689_v25 = vsel %vm688_vm3, 1, %v2211_v24 }
  0x88   : > { %v693_v26 = vrot.slane %v689_v25, %v692_v23  ;;  %v1302_v23 = vld [vmem:[%s2705_s4 + $0x8] sm:$0xff] }
  0x89   : > { %v1912_v24 = vpack.c.bf16 %v1302_v23, %v1301_v22 }
  0x8a   : > { %vm694_vm4 = vcmp.eq.s32.totalorder %v693_v26, 1 }
 0x156   : > { %v604_v10 = vpop.f32.mrb[0].mxu1 }
 0x157   : > { %v2504_v11 = vadd.f32 %v1745_v9, %v604_v10  ;;  %v1823_v12 = vpop.f32.mrb[1].mxu1 }
 0x159   : > { %783 = vrot.lane.b32.xlu1 %v2504_v11, %s2204_s19  ;;  %610 = vrot.lane.b32.xlu0 %v2504_v11, %s2205_s24  ;;  %s2212_s19 = smov 56   ;;  %s2213_s24 = smov 64  }
 0x15d   : > { %952 = vrot.lane.b32.xlu1 %v2504_v11, %s2206_s21  ;;  %785 = vrot.lane.b32.xlu0 %v2504_v11, %s2207_s25  ;;  %s2214_s21 = smov 48   ;;  %s2215_s25 = smov 40  }
 0x161   : > { %1119 = vrot.lane.b32.xlu1 %v2504_v11, %s2208_s13  ;;  %950 = vrot.lane.b32.xlu0 %v2504_v11, %s2209_s20 }
 0x165   : > { %1117 = vrot.lane.b32.xlu0 %v2504_v11, %s2210_s18  ;;  %s2746_s18 = sld [smem:[#allocation18_spill]] }
 0x1cb   : > { %v784_v13 = vpop.permute.xlu1 %783  ;;  %v611_v14 = vpop.permute.xlu0 %610 }
 0x1cc   : > { %1825 = vmatpush3.xpose.msk.msra.mxu1 %vm612_vm2, %v611_v14 }
 0x1cd   : > { %1829 = vmatprep.subr.mxu1 %v2203_v1 }
 0x1cf   : > { %1827 = vmatmul.mubr.msk.f32.vlgmr.msra.gmra.mrb[2].mxu1 %vm612_vm2, %v2504_v11  ;;  %v786_v15 = vpop.permute.xlu0 %785  ;;  %v953_v16 = vpop.permute.xlu1 %952 }
 0x1d0   : > { %1835 = vmatpush3.xpose.msk.msra.mxu0 %vm612_vm2, %v786_v15  ;;  %1831 = vmatprep.mubr.msk.f32.mxu1 %vm2202_vm0, %v2203_v1 }
 0x1d1   : > { %1844 = vmatprep.subr.mxu0 %v2203_v1 }
 0x1d3   : > { %1837 = vmatmul.mubr.msk.f32.vlgmr.msra.gmra.mrb[0].mxu0 %vm612_vm2, %v784_v13  ;;  %v951_v17 = vpop.permute.xlu0 %950  ;;  %v1120_v18 = vpop.permute.xlu1 %1119 }
 0x1d4   : > { %1845 = vmatpush3.xpose.msk.msra.mxu0 %vm612_vm2, %v953_v16  ;;  %1846 = vmatprep.mubr.msk.f32.mxu0 %vm2202_vm0, %v2203_v1 }
 0x1d5   : > { %1854 = vmatprep.subr.mxu0 %v2203_v1 }
 0x1d7   : > { %1847 = vmatmul.mubr.msk.f32.vlgmr.msra.gmra.mrb[2].mxu0 %vm612_vm2, %v951_v17  ;;  %v1118_v19 = vpop.permute.xlu0 %1117 }
 0x1d8   : > { %1855 = vmatpush3.xpose.msk.msra.mxu0 %vm612_vm2, %v1120_v18  ;;  %1856 = vmatprep.mubr.msk.f32.mxu0 %vm2202_vm0, %v2203_v1 }
 0x1d9   : > { %1911 = vmatprep.subr.bf16.mxu0 %v2201_v0 }
 0x1db   : > { %1857 = vmatmul.mubr.msk.f32.vlgmr.msra.gmra.mrb[4].mxu0 %vm612_vm2, %v1118_v19 }
 0x1dc   : > { %1872 = vmatprep.mubr.msk.f32.mxu0 %vm2202_vm0, %v2203_v1  ;;  %1913 = vmatpush3.bf16.msra.mxu0 %v1912_v24 }
 0x1dd   : > { %1914 = vmatprep.subr.bf16.mxu0 %v2201_v0 }
 0x2a2   : > { %v683_v27 = vpop.f32.mrb[2].mxu1 }
 0x2a3   : > { %v687_v28 = vmul.f32 0.35355338, %v683_v27  ;;  %v1828_v29 = vpop.f32.mrb[3].mxu1 }
 0x2a4   : > { %v1303_v29 = vld [vmem:[%s2705_s4 + $0x10] sm:$0xff] }
 0x2a5   : > { %v695_v30 = vsel %vm694_vm4, %v687_v28, -1e+10 }
 0x2a6   : > { %v857_v31 = vpop.f32.mrb[0].mxu0  ;;  %v696_v32 = vsel %vm612_vm2, %v695_v30, -inf }
 0x2a7   : > { %v861_v33 = vmul.f32 0.35355338, %v857_v31  ;;  %v1838_v34 = vpop.f32.mrb[1].mxu0  ;;  %697 = vmax.xlane.f32.xlu1 %v696_v32 }
 0x2a9   : > { %v862_v35 = vsel %vm694_vm4, %v861_v33, -1e+10 }
 0x2aa   : > { %v1024_v36 = vpop.f32.mrb[2].mxu0  ;;  %v863_v37 = vsel %vm612_vm2, %v862_v35, -inf }
 0x2ab   : > { %v1028_v38 = vmul.f32 0.35355338, %v1024_v36  ;;  %864 = vmax.xlane.f32.xlu0 %v863_v37  ;;  %v1848_v39 = vpop.f32.mrb[3].mxu0 }
 0x2ad   : > { %v1029_v40 = vsel %vm694_vm4, %v1028_v38, -1e+10 }
 0x2ae   : > { %v1191_v41 = vpop.f32.mrb[4].mxu0  ;;  %v1030_v42 = vsel %vm612_vm2, %v1029_v40, -inf }
 0x2af   : > { %v1195_v43 = vmul.f32 0.35355338, %v1191_v41  ;;  %1031 = vmax.xlane.f32.xlu0 %v1030_v42  ;;  %v1858_v44 = vpop.f32.mrb[5].mxu0  ;;  %v1759_v42 = vld [vmem:[%s2706_s5] ss:$0 sm:$0xff] }
 0x2b1   : > { %v1196_v45 = vsel %vm694_vm4, %v1195_v43, -1e+10 }
 0x2b2   : > { %v1197_v46 = vsel %vm612_vm2, %v1196_v45, -inf }
 0x2b3   : > { %1198 = vmax.xlane.f32.xlu1 %v1197_v46 }
 0x2c4   : > { %874 = vrot.lane.b32.xlu1 %v2504_v11, %s2212_s19 }
 0x334   : > { %v698_v47 = vpop.xlane.xlu1 %697 }
 0x335   : > { %v699_v48 = vsub.f32 %v695_v30, %v698_v47  ;;  %v1304_v30 = vld [vmem:[%s2705_s4 + $0x18] sm:$0xff] }
 0x336   : > { %v1915_v31 = vpack.c.bf16 %v1304_v30, %v1303_v29 }
 0x337   : > { %v700_v49 = vmul.f32 1.442695, %v699_v48 }
 0x338   : > { %v865_v50 = vpop.xlane.xlu0 %864  ;;  %1916 = vmatpush3.bf16.msra.mxu0 %v1915_v31 }
 0x339   : > { %2020 = vpow2.f32 %v700_v49  ;;  %v866_v51 = vsub.f32 %v862_v35, %v865_v50  ;;  %1923 = vmatprep.subr.bf16.mxu0 %v2201_v0 }
 0x33b   : > { %v867_v52 = vmul.f32 1.442695, %v866_v51 }
 0x33c   : > { %v1032_v62 = vpop.xlane.xlu0 %1031 }
 0x33d   : > { %2022 = vpow2.f32 %v867_v52  ;;  %v1033_v63 = vsub.f32 %v1029_v40, %v1032_v62 }
 0x33f   : > { %v1034_v2 = vmul.f32 1.442695, %v1033_v63  ;;  %v1505_v63 = vld [vmem:[%s2711_s10 + $0x20] sm:$0xff] }
 0x340   : > { %v1199_v53 = vpop.xlane.xlu1 %1198 }
 0x341   : > { %v1200_v54 = vsub.f32 %v1196_v45, %v1199_v53  ;;  %v1417_v53 = vld [vmem:[%s2709_s8 + $0x8] sm:$0xff] }
 0x343   : > { %v2021_v55 = vpop.eup %2020  ;;  %v1201_v56 = vmul.f32 1.442695, %v1200_v54 }
 0x344   : > { %v702_v57 = vsel %vm612_vm2, %v2021_v55, 0.0  ;;  %v875_v5 = vpop.permute.xlu1 %874 }
 0x345   : > { %2024 = vpow2.f32 %v1201_v56  ;;  %703 = vadd.xlane.f32.xlu0 %v702_v57  ;;  %v1501_v57 = vld [vmem:[%s2711_s10] sm:$0xff] }
 0x346   : > { %2026 = vpow2.f32 %v1034_v2  ;;  %v1506_v2 = vld [vmem:[%s2711_s10 + $0x28] sm:$0xff] }
 0x347   : > { %v2023_v58 = vpop.eup %2022 }
 0x348   : > { %v869_v59 = vsel %vm612_vm2, %v2023_v58, 0.0 }
 0x349   : > { %870 = vadd.xlane.f32.xlu1 %v869_v59  ;;  %v1503_v59 = vld [vmem:[%s2711_s10 + $0x10] sm:$0xff] }
 0x34f   : > { %v2025_v60 = vpop.eup %2024 }
 0x350   : > { %v1203_v61 = vsel %vm612_vm2, %v2025_v60, 0.0  ;;  %v2027_v3 = vpop.eup %2026 }
 0x351   : > { %1204 = vadd.xlane.f32.xlu1 %v1203_v61  ;;  %v1036_v4 = vsel %vm612_vm2, %v2027_v3, 0.0  ;;  %v1504_v61 = vld [vmem:[%s2711_s10 + $0x18] sm:$0xff] }
 0x352   : > { %v1927_v62 = vpack.c.bf16 %v1504_v61, %v1503_v59 }
 0x35b   : > { %707 = vrot.lane.b32.xlu0 %v2504_v11, %s2213_s24  ;;  %s1622_s24 = scalar_lea.sflag [#allocation4], %s2461_s7 }
 0x362   : > { %1041 = vrot.lane.b32.xlu1 %v2504_v11, %s2214_s21  ;;  %s2217_s21 = smov 16  }
 0x37a   : > { %1037 = vadd.xlane.f32.xlu0 %v1036_v4 }
 0x390   : > { %1208 = vrot.lane.b32.xlu0 %v2504_v11, %s2215_s25  ;;  %s2218_s25 = smov 24  }
 0x3d2   : > { %v704_v6 = vpop.xlane.xlu0 %703 }
 0x3d3   : > { %2028 = vrcp.f32 %v704_v6 }
 0x3d6   : > { %v708_v7 = vpop.permute.xlu0 %707  ;;  %v871_v9 = vpop.xlane.xlu1 %870 }
 0x3d7   : > { %2030 = vrcp.f32 %v871_v9  ;;  %1830 = vmatpush3.msra.mxu1 %v708_v7  ;;  %v1761_v9 = vld [vmem:[%s2707_s6] ss:$0 sm:$0xff] }
 0x3d8   : > { %1839 = vmatprep.subr.mxu1 %v2203_v1 }
 0x3dd   : > { %v2029_v10 = vpop.eup %2028 }
 0x3de   : > { %v706_v12 = vmul.f32 %v2029_v10, %v2021_v55  ;;  %v1205_v13 = vpop.xlane.xlu1 %1204  ;;  %v1419_v55 = vld [vmem:[%s2709_s8 + $0x18] sm:$0xff] }
 0x3e0   : > { %1832 = vmatmul.mubr.msk.f32.vlgmr.msra.gmra.mrb[4].mxu1 %vm612_vm2, %v706_v12  ;;  %v1762_v12 = vld [vmem:[#allocation5] ss:$0 sm:$0xff] }
 0x3e1   : > { %v2031_v14 = vpop.eup %2030  ;;  %1840 = vmatpush3.msra.mxu1 %v875_v5  ;;  %1841 = vmatprep.mubr.msk.f32.mxu1 %vm2202_vm0, %v2203_v1 }
 0x3e2   : > { %v873_v11 = vmul.f32 %v2031_v14, %v2023_v58  ;;  %v1042_v15 = vpop.permute.xlu1 %1041  ;;  %1849 = vmatprep.subr.mxu1 %v2203_v1  ;;  %v1502_v58 = vld [vmem:[%s2711_s10 + $0x8] sm:$0xff] }
 0x3e4   : > { %1842 = vmatmul.mubr.msk.f32.vlgmr.msra.gmra.mrb[6].mxu1 %vm612_vm2, %v873_v11  ;;  %v1507_v11 = vld [vmem:[%s2711_s10 + $0x30] sm:$0xff] }
 0x3e5   : > { %1850 = vmatpush3.msra.mxu1 %v1042_v15  ;;  %1851 = vmatprep.mubr.msk.f32.mxu1 %vm2202_vm0, %v2203_v1 }
 0x3e6   : > { %1859 = vmatprep.subr.mxu1 %v2203_v1 }
 0x407   : > { %v1038_v16 = vpop.xlane.xlu0 %1037 }
 0x408   : > { %2032 = vrcp.f32 %v1038_v16  ;;  %v1763_v16 = vld [vmem:[#allocation7] ss:$0 sm:$0xff] }
 0x409   : > { %2034 = vrcp.f32 %v1205_v13 }
 0x40b   : > { %v1209_v20 = vpop.permute.xlu0 %1208 }
 0x412   : > { %v2033_v17 = vpop.eup %2032 }
 0x413   : > { %v1040_v18 = vmul.f32 %v2033_v17, %v2027_v3  ;;  %v2035_v19 = vpop.eup %2034  ;;  %v1930_v3 = vpack.c.bf16 %v1506_v2, %v1505_v63 }
 0x414   : > { %v1207_v21 = vmul.f32 %v2035_v19, %v2025_v60  ;;  %v1924_v60 = vpack.c.bf16 %v1502_v58, %v1501_v57 }
 0x415   : > { %1852 = vmatmul.mubr.msk.f32.vlgmr.msra.gmra.mrb[8].mxu1 %vm612_vm2, %v1040_v18 }
 0x416   : > { %1860 = vmatpush3.msra.mxu1 %v1209_v20  ;;  %1861 = vmatprep.mubr.msk.f32.mxu1 %vm2202_vm0, %v2203_v1 }
 0x417   : > { %1917 = vmatprep.subr.bf16.mxu1 %v2201_v0 }
 0x419   : > { %1862 = vmatmul.mubr.msk.f32.vlgmr.msra.gmra.mrb[10].mxu1 %vm612_vm2, %v1207_v21  ;;  %v1765_v21 = vld [vmem:[%s2712_s11] ss:$0 sm:$0xff] }
 0x41a   : > { %1883 = vmatprep.mubr.msk.f32.mxu1 %vm2202_vm0, %v2203_v1 }
 0x4b3   : > { %v779_v25 = vpop.f32.mrb[4].mxu1 }
 0x4b4   : > { %v1833_v26 = vpop.f32.mrb[5].mxu1 }
 0x4b7   : > { %v946_v27 = vpop.f32.mrb[6].mxu1 }
 0x4b8   : > { %1285 = vrot.lane.b32.xlu1 %v946_v27, %s2216_s28  ;;  %v1843_v28 = vpop.f32.mrb[7].mxu1  ;;  %s518_s28 = scalar_lea.vmem [#allocation8], %s1741_s23  ;;  %s2130_s23 = sshll.u32 %s2219_s17, 4  ;;  %s2131_s23 = int_to_ptr.vmem [resolvable:$false] %s2130_s23 }
 0x4b9   : > { %s1635_s12 = sshll.u32 %s518_s28, 4  ;;  %s2658_s12 = int_to_ptr.vmem [resolvable:$true] %s1635_s12 }
 0x4ba   : > { %p2133_p12 = scmp.lt.s32.totalorder %s2658_s12, %s2131_s23 }
 0x4e8   : > { %v1113_v32 = vpop.f32.mrb[8].mxu1 }
 0x4e9   : > { %1289 = vrot.lane.b32.xlu0 %v1113_v32, %s2217_s21  ;;  %v1853_v33 = vpop.f32.mrb[9].mxu1  ;;  %s2126_s21 = scalar_lea.vmem %s2658_s12, 128 }
 0x4ea   : > { %p2127_p1 = scmp.ne.s32.totalorder %s2658_s12, %s2126_s21 }
 0x4ec   : > { %v1280_v34 = vpop.f32.mrb[10].mxu1  ;;  %p2128_p4 = pnand %p2127_p1, %p2415_p6 }
 0x4ed   : > { %1293 = vrot.lane.b32.xlu1 %v1280_v34, %s2218_s25  ;;  %v1863_v35 = vpop.f32.mrb[11].mxu1  ;;  %s2745_s25 = sld [smem:[#allocation17_spill]] }
 0x4ee   : > { %p2129_p8 = pneg %p2128_p4 }
 0x52a   : > { %v1286_v36 = vpop.permute.xlu1 %1285 }
 0x52b   : > { %v1296_v38 = vsel %vm612_vm2, %v779_v25, %v1286_v36  ;;  %v1767_v36 = vld [vmem:[%s2745_s25] ss:$0 sm:$0xff]  ;;  %s2132_s25 = scalar_lea.vmem %s2131_s23, 256 }
 0x52c   : > { %p2134_p3 = scmp.lt.s32.totalorder %s2132_s25, %s2126_s21 }
 0x52e   : > { %p2135_p7 = por %p2134_p3, %p2133_p12 }
 0x530   : > { %p2136_p10 = pnand %p2135_p7, %p2129_p8 }
 0x55b   : > { %v1290_v37 = vpop.permute.xlu0 %1289 }
 0x55c   : > { %v1298_v39 = vsel %vm1297_vm5, %v1296_v38, %v1290_v37  ;;  %v1768_v38 = vld [vmem:[%s2746_s18] ss:$0 sm:$0xff] }
 0x55f   : > { %v1294_v40 = vpop.permute.xlu1 %1293 }
 0x560   : > { %v1300_v41 = vsel %vm1299_vm6, %v1298_v39, %v1294_v40 }
 0x561   : > { %1873 = vmatmul.mubr.msk.f32.vlgmr.msra.gmra.mrb[6].mxu0 %vm534_vm1, %v1300_v41 }
 0x562   : > { %1902 = vmatprep.mubr.msk.f32.mxu0 %vm2202_vm0, %v2203_v1  ;;  %v1416_v1 = vld [vmem:[%s2709_s8] sm:$0xff]  ;;  %1925 = vmatpush3.bf16.msra.mxu0 %v1924_v60 }
 0x563   : > { %v1918_v54 = vpack.c.bf16 %v1417_v53, %v1416_v1  ;;  %1926 = vmatprep.subr.bf16.mxu0 %v2201_v0 }
 0x565   : > { %1919 = vmatpush3.bf16.msra.mxu1 %v1918_v54 }
 0x566   : > { %1920 = vmatprep.subr.bf16.mxu1 %v2201_v0  ;;  %1928 = vmatpush3.bf16.msra.mxu0 %v1927_v62 }
 0x567   : > { %1929 = vmatprep.subr.bf16.mxu0 %v2201_v0 }
 0x56a   : > { %1931 = vmatpush3.bf16.msra.mxu0 %v1930_v3 }
 0x56b   : > { %1932 = vmatprep.subr.bf16.mxu0 %v2201_v0  ;;  %v1508_v0 = vld [vmem:[%s2711_s10 + $0x38] sm:$0xff] }
 0x56c   : > { %v1933_v15 = vpack.c.bf16 %v1508_v0, %v1507_v11 }
 0x56e   : > { %1934 = vmatpush3.bf16.msra.mxu0 %v1933_v15 }
 0x634   : > { %v1381_v43 = vpop.f32.mrb[6].mxu0 }
 0x635   : > { %v1382_v44 = vadd.f32 %v1759_v42, %v1381_v43  ;;  %v1874_v45 = vpop.f32.mrb[7].mxu0 }
 0x637   : > { %v1385_v46 = vadd.f32 %v1382_v44, %v2494_v8  ;;  %v1418_v8 = vld [vmem:[%s2709_s8 + $0x10] sm:$0xff] }
 0x638   : > { %v1921_v56 = vpack.c.bf16 %v1419_v55, %v1418_v8 }
 0x639   : > { %v1388_v47 = vsel %vm534_vm1, %v1385_v46, 0.0 }
 0x63a   : > { %1389 = vadd.xlane.f32.xlu0 %v1388_v47  ;;  %1922 = vmatpush3.bf16.msra.mxu1 %v1921_v56 }
 0x6c7   : > { %v1390_v48 = vpop.xlane.xlu0 %1389 }
 0x6c8   : > { %v1392_v49 = vmul.f32 0.03125, %v1390_v48 }
 0x6ca   : > { %v1393_v50 = vsub.f32 %v1385_v46, %v1392_v49 }
 0x6cc   : > { %v1394_v51 = vmul.f32 %v1393_v50, %v1393_v50 }
 0x6ce   : > { %v1395_v52 = vsel %vm534_vm1, %v1394_v51, 0.0 }
 0x6cf   : > { %1396 = vadd.xlane.f32.xlu1 %v1395_v52 }
 0x75c   : > { %v1397_v4 = vpop.xlane.xlu1 %1396 }
 0x75d   : > { %v1398_v5 = vmul.f32 0.03125, %v1397_v4 }
 0x75f   : > { %v1399_v6 = vadd.f32 1e-05, %v1398_v5 }
 0x761   : > { %2036 = vrsqrt.f32 %v1399_v6 }
 0x76b   : > { %v2037_v7 = vpop.eup %2036 }
 0x76c   : > { %v1401_v10 = vmul.f32 %v2037_v7, %v1393_v50 }
 0x76e   : > { %v1408_v13 = vmul.f32 %v1761_v9, %v1401_v10 }
 0x770   : > { %v1415_v14 = vadd.f32 %v1762_v12, %v1408_v13 }
 0x772   : > { %1884 = vmatmul.mubr.msk.f32.vlgmr.msra.gmra.mrb[12].mxu1 %vm534_vm1, %v1415_v14 }
 0x845   : > { %v1496_v17 = vpop.f32.mrb[12].mxu1 }
 0x846   : > { %v1497_v18 = vadd.f32 %v1763_v16, %v1496_v17  ;;  %v1885_v19 = vpop.f32.mrb[13].mxu1 }
 0x848   : > { %v1500_v20 = vmax.f32 %v1497_v18, 0.0 }
 0x84a   : > { %1903 = vmatmul.mubr.msk.f32.vlgmr.msra.gmra.mrb[8].mxu0 %vm1516_vm7, %v1500_v20 }
 0x91d   : > { %v1586_v22 = vpop.f32.mrb[8].mxu0 }
 0x91e   : > { %v1587_v23 = vadd.f32 %v1765_v21, %v1586_v22  ;;  %v1904_v24 = vpop.f32.mrb[9].mxu0 }
 0x920   : > { %v1590_v25 = vadd.f32 %v1587_v23, %v1415_v14 }
 0x922   : > { %v1593_v26 = vsel %vm534_vm1, %v1590_v25, 0.0 }
 0x923   : > { %1594 = vadd.xlane.f32.xlu0 %v1593_v26 }
 0x9b0   : > { %v1595_v27 = vpop.xlane.xlu0 %1594 }
 0x9b1   : > { %v1596_v28 = vmul.f32 0.03125, %v1595_v27 }
 0x9b3   : > { %v1597_v29 = vsub.f32 %v1590_v25, %v1596_v28 }
 0x9b5   : > { %v1598_v30 = vmul.f32 %v1597_v29, %v1597_v29 }
 0x9b7   : > { %v1599_v31 = vsel %vm534_vm1, %v1598_v30, 0.0 }
 0x9b8   : > { %1600 = vadd.xlane.f32.xlu0 %v1599_v31 }
 0xa45   : > { %v1601_v32 = vpop.xlane.xlu0 %1600 }
 0xa46   : > { %v1602_v33 = vmul.f32 0.03125, %v1601_v32 }
 0xa48   : > { %v1603_v34 = vadd.f32 1e-05, %v1602_v33 }
 0xa4a   : > { %2038 = vrsqrt.f32 %v1603_v34 }
 0xa54   : > { %v2039_v35 = vpop.eup %2038 }
 0xa55   : > { %v1605_v37 = vmul.f32 %v2039_v35, %v1597_v29 }
 0xa57   : > { %v1612_v39 = vmul.f32 %v1767_v36, %v1605_v37 }
 0xa59   : > { %v1619_v40 = vadd.f32 %v1768_v38, %v1612_v39 }
 0xa5b   : > { %1620 = vst.msk [vmem:[%s518_s28] sm:$0xff] %vm534_vm1, %v1619_v40 }
 0xa5c   : > { %2139 = shalt.err (!%p2136_p10)
}
 0xa5d   : > { %s2140_s7 = scalar_lea.hbm %s2656_s1, 128  ;;  %s2144_s18 = scalar_lea.hbm %s2747_s0, 256 }
 0xa5e   : > { %p2141_p13 = scmp.ne.s32.totalorder %s2656_s1, %s2140_s7  ;;  %p2145_p11 = scmp.lt.u32.totalorder %s2656_s1, %s2747_s0 }
 0xa5f   : > { %p2146_p9 = scmp.lt.u32.totalorder %s2144_s18, %s2140_s7  ;;  %p2148_p1 = scmp.lt.u32.totalorder %s2140_s7, %s2656_s1 }
 0xa60   : > { %p2142_p5 = pnand %p2141_p13, %p2415_p6 }
 0xa61   : > { %p2147_p2 = por %p2146_p9, %p2145_p11 }
 0xa62   : > { %p2143_p0 = pneg %p2142_p5 }
 0xa63   : > { %p2149_p4 = por %p2148_p1, %p2147_p2 }
 0xa65   : > { %p2150_p8 = pnand %p2149_p4, %p2143_p0 }
 0xa67   : > { %2153 = shalt.err (!%p2150_p8)
}
 0xa68   : > { %1945 = dma.vmem_to_hbm [thread:$0]  (%p2415_p6), %s2658_s12, 128, %s2656_s1, %s1622_s24  }
 0xa69 PF: > { %s2748_s29 = sld [smem:[#allocation12_spill]]  ;;  %s2749_s19 = sld [smem:[#allocation13_spill]] }
 0xa6a   : > { %p2751_p3 = scmp.ge.s32.totalorder %s2196_s16, 2 }
 0xa6f   : > { %s1647_s21 = sand.u32 1, %s2748_s29   ;;  %p2750_p12 = scmp.ne.s32.totalorder %s2749_s19, 0 }
 0xa70   : > { %s1648_s17 = scalar_lea.sflag [#allocation4], %s1647_s21 }
 0xa71   : > { %p1959_p7 = pnand %p2751_p3, %p2750_p12 }
 0xa73   : > { %2179 = dma.done.wait (!%p1959_p7), %s1648_s17, 128  }
 0xa74   : > { %2181 = vsyncadd (!%p1959_p7), %s1648_s17, 4294967168  ;;  %p28_p10 = scmp.ge.s32.totalorder %s2351_s27, 4   ;;  %s2752_s29 = smov %s2188_s30 }
 0xa75   : > { %s2753_s30 = smov %s2192_s15  ;;  %s2754_s15 = smov %s2411_s26 }
 0xa76   : > { %s2755_s16 = smov %s2351_s27  ;;  %30 = sbr.rel (!%p28_p10) target bundleno = 13 (0xd), region = 132 }
 0xa7d   :  { %1653 = vsyncpa [#allocation3], 1 }
 0xa7e   :  { %1655 = vsyncpa [#allocation3 + $0x1], 1 }
 0xa7f   :  { %1656 = vsyncpa [#allocation6], 1 }
 0xa80   :  { %1657 = vsyncpa [#allocation4], 1 }
 0xa81   :  { %1659 = vsyncpa [#allocation4 + $0x1], 1 }

</bundles_post_ra>
